<compile_context>
chip_gen: v6e
topology: v6e:2x2x1
jax: 0.10.0
libtpu: 0.0.40
codegen_flags: <defaults>
</compile_context>

<pallas_src>
import functools

import jax
import jax.numpy as jnp
from jax import lax
from jax.experimental import pallas as pl
from jax.experimental.pallas import tpu as pltpu


def _round_up(x, m):
    return ((x + m - 1) // m) * m


# ----------------------------- Pallas kernel -------------------------------

def _pconv_bn_lrelu_kernel(x_ref, w_ref, c_ref, o_ref, taps_ref, *,
                           offsets, c_out, c_pad, slide_winsize, relu_factor):
    """Fused PartialConv2d + folded BatchNorm + LeakyReLU for one batch element.

    x_ref   : (1, C_pad, L_in)        bf16  masked-image channels + mask channel-sum row,
                                            spatial flattened row-major on the lane axis.
    w_ref   : (R_pad, kh*kw*C_pad)    bf16  flattened augmented weights, BN scale pre-folded;
                                            row c_out is the "ones" row -> mask-sum.
    c_ref   : (2, C_out, 1)           f32   [0] = bias*scale, [1] = BN shift.
    o_ref   : (1, C_out, L_acc)       bf16  stride-1 conv output, spatial (ho*W + wo) on lanes.
    taps_ref: (kh*kw*C_pad, L_acc)    bf16  VMEM scratch: stacked shifted views (im2col in VMEM).
    """
    l_acc = o_ref.shape[2]

    x = x_ref[0]                                            # (C_pad, L_in) bf16, loaded once

    # Build the stacked-tap operand: sublane-aligned stores (C_pad = 16 = bf16 packing).
    for t, off in enumerate(offsets):                       # kh*kw static taps, unrolled
        taps_ref[t * c_pad:(t + 1) * c_pad, :] = x[:, off:off + l_acc]

    # One MXU matmul: M = R_pad, K = kh*kw*C_pad, N = L_acc, f32 accumulation.
    acc = jnp.dot(w_ref[...], taps_ref[...], preferred_element_type=jnp.float32)

    raw = acc[:c_out]                                       # (C_out, L) conv(image*mask, W*scale)
    msum = acc[c_out:c_out + 1]                             # (1, L)     conv(mask, ones) (exact)

    um = jnp.clip(msum, 0.0, 1.0)                           # updated mask
    ratio = slide_winsize * pl.reciprocal(msum + 1e-8, approx=True) * um   # EUP reciprocal

    b = c_ref[0]                                            # (C_out, 1) bias*scale
    shift = c_ref[1]                                        # (C_out, 1) BN shift
    out = ((raw - b) * ratio + b) * um + shift              # partial-conv renorm + folded BN
    out = jnp.where(out >= 0.0, out, relu_factor * out)     # LeakyReLU
    o_ref[0] = out.astype(o_ref.dtype)                      # cast only at the store (bf16)


# ------------------------------ JAX wrapper ----------------------------------

def _nearest_upsample_nchw(x, out_hw):
    """PyTorch F.interpolate(mode='nearest'): src = floor(dst * in/out)."""
    n, c, h, w = x.shape
    ho, wo = out_hw
    if ho == h and wo == w:
        return x
    if ho % h == 0 and wo % w == 0:              # integer factor: broadcast, no gather
        fh, fw = ho // h, wo // w
        x = jnp.broadcast_to(x[:, :, :, None, :, None], (n, c, h, fh, w, fw))
        return x.reshape(n, c, ho, wo)
    hi = (jnp.arange(ho) * h) // ho
    wi = (jnp.arange(wo) * w) // wo
    return x[:, :, hi[:, None], wi[None, :]]


def partial_decoder_block(image_in, mask_in, concat_image, concat_mask, params,
                          kernel_size=(3, 3), stride=(1, 1),
                          bn_eps=1e-5, relu_factor=0.0, out_dtype=jnp.bfloat16):
    kh, kw = kernel_size
    sh, sw = stride
    n, c_in = image_in.shape[:2]
    _, c_skip, h, w = concat_image.shape
    c_tot = c_in + c_skip
    slide_winsize = float(c_tot * kh * kw)

    # -- minimal HBM prep: multiply / channel-sum at LOW res (nearest upsample commutes with
    #    elementwise ops), cast pieces to bf16, one concat + one pad into the packed layout.
    masked_lo = _nearest_upsample_nchw((image_in * mask_in).astype(jnp.bfloat16), (h, w))
    masked_hi = (concat_image * concat_mask).astype(jnp.bfloat16)
    mrow = (_nearest_upsample_nchw(jnp.sum(mask_in, axis=1, keepdims=True), (h, w))
            + jnp.sum(concat_mask, axis=1, keepdims=True)).astype(jnp.bfloat16)
    xin = jnp.concatenate([masked_lo, masked_hi, mrow], axis=1)      # (N, C_tot+1, H, W) bf16

    c_pad = _round_up(c_tot + 1, 16)                        # bf16 sublane packing
    ho_full, wo_full = h - kh + 1, w - kw + 1               # stride-1 VALID output
    l_acc = _round_up(ho_full * w, 128)                     # lane-dense output width
    max_off = (kh - 1) * w + (kw - 1)
    l_in = _round_up(max(h * w, max_off + l_acc), 128)

    xin = xin.reshape(n, c_tot + 1, h * w)
    xin = jnp.pad(xin, ((0, 0), (0, c_pad - (c_tot + 1)), (0, l_in - h * w)))

    # -- fold inference BatchNorm into the conv: W' = W*scale, b' = b*scale, plus shift.
    scale = (params["gamma"] / jnp.sqrt(params["running_var"] + bn_eps)).astype(jnp.float32)
    shift = (params["beta"] - params["running_mean"] * scale).astype(jnp.float32)

    wt = params["weight"].astype(jnp.float32) * scale[:, None, None, None]   # (C_out, C_tot, kh, kw)
    c_out = wt.shape[0]
    r_pad = _round_up(c_out + 1, 8)
    n_taps = kh * kw
    w_taps = jnp.transpose(wt, (2, 3, 0, 1)).reshape(n_taps, c_out, c_tot)
    w_aug = jnp.zeros((n_taps, r_pad, c_pad), jnp.float32)
    w_aug = w_aug.at[:, :c_out, :c_tot].set(w_taps)
    w_aug = w_aug.at[:, c_out, c_tot].set(1.0)               # "ones" row -> mask-sum output
    w_flat = jnp.transpose(w_aug, (1, 0, 2)).reshape(r_pad, n_taps * c_pad).astype(jnp.bfloat16)

    consts = jnp.stack([params["bias"].astype(jnp.float32) * scale, shift]).reshape(2, c_out, 1)

    offsets = tuple(dh * w + dw for dh in range(kh) for dw in range(kw))
    kernel = functools.partial(_pconv_bn_lrelu_kernel, offsets=offsets, c_out=c_out,
                               c_pad=c_pad, slide_winsize=slide_winsize,
                               relu_factor=relu_factor)

    out_flat = pl.pallas_call(
        kernel,
        out_shape=jax.ShapeDtypeStruct((n, c_out, l_acc), out_dtype),
        grid=(n,),
        in_specs=[
            pl.BlockSpec((1, c_pad, l_in), lambda i: (i, 0, 0)),          # activations (bf16)
            pl.BlockSpec((r_pad, n_taps * c_pad), lambda i: (0, 0)),      # folded weights (bf16)
            pl.BlockSpec((2, c_out, 1), lambda i: (0, 0, 0)),             # merged constants (f32)
        ],
        out_specs=pl.BlockSpec((1, c_out, l_acc), lambda i: (i, 0, 0)),
        scratch_shapes=[pltpu.VMEM((n_taps * c_pad, l_acc), jnp.bfloat16)],
        compiler_params=pltpu.CompilerParams(dimension_semantics=("parallel",)),
    )(xin, w_flat, consts)

    # drop wrap-around columns (width was run to W, not Wo), apply stride, back to NCHW
    out = out_flat[:, :, :ho_full * w].reshape(n, c_out, ho_full, w)[:, :, :, :wo_full]
    return out[:, :, ::sh, ::sw]


# --------------------------- pure-JAX references ------------------------------

def _reference_f32(image_in, mask_in, concat_image, concat_mask, params,
                   kernel_size, stride, bn_eps, relu_factor):
    """True module math in f32 (upsample -> concat -> PartialConv2d -> BN(eval) -> LeakyReLU)."""
    kh, kw = kernel_size
    _, _, h, w = concat_image.shape
    img_up = _nearest_upsample_nchw(image_in, (h, w))
    msk_up = _nearest_upsample_nchw(mask_in, (h, w))
    image = jnp.concatenate([img_up, concat_image], axis=1)
    mask = jnp.concatenate([msk_up, concat_mask], axis=1)
    dn = ("NCHW", "OIHW", "NCHW")
    raw = lax.conv_general_dilated(image * mask, params["weight"], stride, "VALID",
                                   dimension_numbers=dn, precision=lax.Precision.HIGHEST)
    ones_k = jnp.ones((1, image.shape[1], kh, kw), jnp.float32)
    msum = lax.conv_general_dilated(mask, ones_k, stride, "VALID",
                                    dimension_numbers=dn, precision=lax.Precision.HIGHEST)
    winsize = float(image.shape[1] * kh * kw)
    um = jnp.clip(msum, 0.0, 1.0)
    ratio = winsize / (msum + 1e-8) * um
    bv = params["bias"][None, :, None, None]
    out = ((raw - bv) * ratio + bv) * um
    g = params["gamma"][None, :, None, None]
    beta = params["beta"][None, :, None, None]
    rm = params["running_mean"][None, :, None, None]
    rv = params["running_var"][None, :, None, None]
    out = (out - rm) / jnp.sqrt(rv + bn_eps) * g + beta
    return jnp.where(out >= 0.0, out, relu_factor * out)


def _reference_bf16(image_in, mask_in, concat_image, concat_mask, params,
                    kernel_size, stride, bn_eps, relu_factor):
    """Algebraically identical math with BN scale folded into the conv weight and the same
    bf16 rounding of activations/weights the kernel streams from HBM (tight check)."""
    kh, kw = kernel_size
    _, _, h, w = concat_image.shape
    img_up = _nearest_upsample_nchw(image_in, (h, w))
    msk_up = _nearest_upsample_nchw(mask_in, (h, w))
    image = jnp.concatenate([img_up, concat_image], axis=1)
    mask = jnp.concatenate([msk_up, concat_mask], axis=1)
    scale = params["gamma"] / jnp.sqrt(params["running_var"] + bn_eps)
    w_fold = (params["weight"] * scale[:, None, None, None]).astype(jnp.bfloat16)
    b_fold = params["bias"] * scale
    shift = params["beta"] - params["running_mean"] * scale
    dn = ("NCHW", "OIHW", "NCHW")
    raw = lax.conv_general_dilated((image * mask).astype(jnp.bfloat16), w_fold, stride,
                                   "VALID", dimension_numbers=dn,
                                   preferred_element_type=jnp.float32)
    ones_k = jnp.ones((1, image.shape[1], kh, kw), jnp.float32)
    msum = lax.conv_general_dilated(mask, ones_k, stride, "VALID",
                                    dimension_numbers=dn, precision=lax.Precision.HIGHEST)
    winsize = float(image.shape[1] * kh * kw)
    um = jnp.clip(msum, 0.0, 1.0)
    ratio = winsize / (msum + 1e-8) * um
    bv = b_fold[None, :, None, None]
    out = ((raw - bv) * ratio + bv) * um + shift[None, :, None, None]
    return jnp.where(out >= 0.0, out, relu_factor * out)


# ---------------------------------- main -------------------------------------

if __name__ == "__main__":
    key = jax.random.PRNGKey(0)
    k1, k2, k3, k4, k5, k6, k7, k8 = jax.random.split(key, 8)

    in_channel, out_channel = 4, 4
    kernel_size, stride = (3, 3), (1, 1)
    relu_factor = 0.0
    n = 2

    # low-res decoder input (image, mask) and skip-connection tensors
    x_image = jax.random.normal(k1, (n, in_channel, 8, 8), jnp.float32)
    x_mask = (jax.random.uniform(k2, (n, in_channel, 8, 8)) > 0.3).astype(jnp.float32)
    concat_image = jax.random.normal(k3, (n, out_channel, 16, 16), jnp.float32)
    concat_mask = (jax.random.uniform(k4, (n, out_channel, 16, 16)) > 0.3).astype(jnp.float32)

    c_tot = in_channel + out_channel
    params = dict(
        weight=0.1 * jax.random.normal(k5, (out_channel, c_tot) + kernel_size, jnp.float32),
        bias=0.05 * jax.random.normal(k6, (out_channel,), jnp.float32),
        gamma=1.0 + 0.1 * jax.random.normal(k7, (out_channel,), jnp.float32),
        beta=0.1 * jax.random.normal(k8, (out_channel,), jnp.float32),
        running_mean=0.01 * jnp.arange(out_channel, dtype=jnp.float32),
        running_var=1.0 + 0.1 * jnp.arange(out_channel, dtype=jnp.float32),
    )

    fwd = jax.jit(functools.partial(partial_decoder_block,
                                    kernel_size=kernel_size, stride=stride,
                                    relu_factor=relu_factor))
    out = fwd(x_image, x_mask, concat_image, concat_mask, params)
    out = jax.block_until_ready(out)
    out_f32 = out.astype(jnp.float32)

    # tight check vs the bf16-matched folded reference (isolates kernel mechanics)
    ref_q = _reference_bf16(x_image, x_mask, concat_image, concat_mask, params,
                            kernel_size, stride, 1e-5, relu_factor)
    # loose check vs the true f32 module math (validates folding algebra / semantics)
    ref_f = _reference_f32(x_image, x_mask, concat_image, concat_mask, params,
                           kernel_size, stride, 1e-5, relu_factor)

    assert out_f32.shape == ref_q.shape, (out_f32.shape, ref_q.shape)
    err_q = float(jnp.max(jnp.abs(out_f32 - ref_q)))
    err_f = float(jnp.max(jnp.abs(out_f32 - ref_f)))
    assert jnp.allclose(out_f32, ref_q, atol=5e-3, rtol=5e-3), err_q
    assert jnp.allclose(out_f32, ref_f, atol=3e-2, rtol=3e-2), err_f
    print("KERNEL_OK")
</pallas_src>

<mosaic_0001>
module attributes {stable_mosaic.version = 11 : i64} {
  func.func @_pconv_bn_lrelu_kernel(%arg0: i32, %arg1: memref<1x16x384xbf16, #tpu.memory_space<vmem>>, %arg2: memref<8x144xbf16, #tpu.memory_space<vmem>>, %arg3: memref<2x4x1xf32, #tpu.memory_space<vmem>>, %arg4: memref<1x4x256xbf16, #tpu.memory_space<vmem>>, %arg5: memref<144x256xbf16, #tpu.memory_space<vmem>>) attributes {dimension_semantics = [#tpu.dimension_semantics<parallel>], iteration_bounds = array<i64: 2>, scalar_prefetch = 0 : i64, scratch_operands = 1 : i64, tpu.core_type = #tpu.core_type<tc>, window_params = [{transform_indices = @transform_0, window_bounds = array<i64: 1, 16, 384>}, {pipeline_mode = #tpu.pipeline_mode<synchronous>, transform_indices = @transform_1, window_bounds = array<i64: 8, 144>}, {pipeline_mode = #tpu.pipeline_mode<synchronous>, transform_indices = @transform_2, window_bounds = array<i64: 2, 4, 1>}, {transform_indices = @transform_3, window_bounds = array<i64: 1, 4, 256>}]} {
    %c0 = arith.constant 0 : index
    %c0_0 = arith.constant 0 : index
    %c0_1 = arith.constant 0 : index
    %0 = vector.load %arg1[%c0, %c0_0, %c0_1] : memref<1x16x384xbf16, #tpu.memory_space<vmem>>, vector<1x16x384xbf16>
    %1 = vector.shape_cast %0 : vector<1x16x384xbf16> to vector<16x384xbf16>
    %2 = vector.extract_strided_slice %1 {offsets = [0, 0], sizes = [16, 256], strides = [1, 1]} : vector<16x384xbf16> to vector<16x256xbf16>
    %c0_2 = arith.constant 0 : index
    %c0_3 = arith.constant 0 : index
    %3 = vector.load %arg5[%c0_2, %c0_3] : memref<144x256xbf16, #tpu.memory_space<vmem>>, vector<16x256xbf16>
    tpu.vector_store %arg5[%c0_2, %c0_3], %2 {strides = array<i32>} : memref<144x256xbf16, #tpu.memory_space<vmem>>, vector<16x256xbf16>,
    %4 = vector.extract_strided_slice %1 {offsets = [0, 1], sizes = [16, 256], strides = [1, 1]} : vector<16x384xbf16> to vector<16x256xbf16>
    %c16 = arith.constant 16 : index
    %c0_4 = arith.constant 0 : index
    %5 = vector.load %arg5[%c16, %c0_4] : memref<144x256xbf16, #tpu.memory_space<vmem>>, vector<16x256xbf16>
    tpu.vector_store %arg5[%c16, %c0_4], %4 {strides = array<i32>} : memref<144x256xbf16, #tpu.memory_space<vmem>>, vector<16x256xbf16>,
    %6 = vector.extract_strided_slice %1 {offsets = [0, 2], sizes = [16, 256], strides = [1, 1]} : vector<16x384xbf16> to vector<16x256xbf16>
    %c32 = arith.constant 32 : index
    %c0_5 = arith.constant 0 : index
    %7 = vector.load %arg5[%c32, %c0_5] : memref<144x256xbf16, #tpu.memory_space<vmem>>, vector<16x256xbf16>
    tpu.vector_store %arg5[%c32, %c0_5], %6 {strides = array<i32>} : memref<144x256xbf16, #tpu.memory_space<vmem>>, vector<16x256xbf16>,
    %8 = vector.extract_strided_slice %1 {offsets = [0, 16], sizes = [16, 256], strides = [1, 1]} : vector<16x384xbf16> to vector<16x256xbf16>
    %c48 = arith.constant 48 : index
    %c0_6 = arith.constant 0 : index
    %9 = vector.load %arg5[%c48, %c0_6] : memref<144x256xbf16, #tpu.memory_space<vmem>>, vector<16x256xbf16>
    tpu.vector_store %arg5[%c48, %c0_6], %8 {strides = array<i32>} : memref<144x256xbf16, #tpu.memory_space<vmem>>, vector<16x256xbf16>,
    %10 = vector.extract_strided_slice %1 {offsets = [0, 17], sizes = [16, 256], strides = [1, 1]} : vector<16x384xbf16> to vector<16x256xbf16>
    %c64 = arith.constant 64 : index
    %c0_7 = arith.constant 0 : index
    %11 = vector.load %arg5[%c64, %c0_7] : memref<144x256xbf16, #tpu.memory_space<vmem>>, vector<16x256xbf16>
    tpu.vector_store %arg5[%c64, %c0_7], %10 {strides = array<i32>} : memref<144x256xbf16, #tpu.memory_space<vmem>>, vector<16x256xbf16>,
    %12 = vector.extract_strided_slice %1 {offsets = [0, 18], sizes = [16, 256], strides = [1, 1]} : vector<16x384xbf16> to vector<16x256xbf16>
    %c80 = arith.constant 80 : index
    %c0_8 = arith.constant 0 : index
    %13 = vector.load %arg5[%c80, %c0_8] : memref<144x256xbf16, #tpu.memory_space<vmem>>, vector<16x256xbf16>
    tpu.vector_store %arg5[%c80, %c0_8], %12 {strides = array<i32>} : memref<144x256xbf16, #tpu.memory_space<vmem>>, vector<16x256xbf16>,
    %14 = vector.extract_strided_slice %1 {offsets = [0, 32], sizes = [16, 256], strides = [1, 1]} : vector<16x384xbf16> to vector<16x256xbf16>
    %c96 = arith.constant 96 : index
    %c0_9 = arith.constant 0 : index
    %15 = vector.load %arg5[%c96, %c0_9] : memref<144x256xbf16, #tpu.memory_space<vmem>>, vector<16x256xbf16>
    tpu.vector_store %arg5[%c96, %c0_9], %14 {strides = array<i32>} : memref<144x256xbf16, #tpu.memory_space<vmem>>, vector<16x256xbf16>,
    %16 = vector.extract_strided_slice %1 {offsets = [0, 33], sizes = [16, 256], strides = [1, 1]} : vector<16x384xbf16> to vector<16x256xbf16>
    %c112 = arith.constant 112 : index
    %c0_10 = arith.constant 0 : index
    %17 = vector.load %arg5[%c112, %c0_10] : memref<144x256xbf16, #tpu.memory_space<vmem>>, vector<16x256xbf16>
    tpu.vector_store %arg5[%c112, %c0_10], %16 {strides = array<i32>} : memref<144x256xbf16, #tpu.memory_space<vmem>>, vector<16x256xbf16>,
    %18 = vector.extract_strided_slice %1 {offsets = [0, 34], sizes = [16, 256], strides = [1, 1]} : vector<16x384xbf16> to vector<16x256xbf16>
    %c128 = arith.constant 128 : index
    %c0_11 = arith.constant 0 : index
    %19 = vector.load %arg5[%c128, %c0_11] : memref<144x256xbf16, #tpu.memory_space<vmem>>, vector<16x256xbf16>
    tpu.vector_store %arg5[%c128, %c0_11], %18 {strides = array<i32>} : memref<144x256xbf16, #tpu.memory_space<vmem>>, vector<16x256xbf16>,
    %c0_12 = arith.constant 0 : index
    %c0_13 = arith.constant 0 : index
    %20 = vector.load %arg2[%c0_12, %c0_13] : memref<8x144xbf16, #tpu.memory_space<vmem>>, vector<8x144xbf16>
    %c0_14 = arith.constant 0 : index
    %c0_15 = arith.constant 0 : index
    %21 = vector.load %arg5[%c0_14, %c0_15] : memref<144x256xbf16, #tpu.memory_space<vmem>>, vector<144x256xbf16>
    %cst = arith.constant dense<0.000000e+00> : vector<8x256xf32>
    %22 = tpu.matmul %20, %21, %cst {dimension_numbers = #tpu.dot_dimension_numbers<[1], [0], [0], [1], [0, 0, 1, 1], [], []>} : vector<8x144xbf16>, vector<144x256xbf16>, vector<8x256xf32> -> vector<8x256xf32>
    %23 = vector.extract_strided_slice %22 {offsets = [0, 0], sizes = [4, 256], strides = [1, 1]} : vector<8x256xf32> to vector<4x256xf32>
    %24 = vector.extract_strided_slice %22 {offsets = [4, 0], sizes = [1, 256], strides = [1, 1]} : vector<8x256xf32> to vector<1x256xf32>
    %cst_16 = arith.constant 0.000000e+00 : f32
    %cst_17 = arith.constant 1.000000e+00 : f32
    %25 = vector.broadcast %cst_16 : f32 to vector<1x256xf32>
    %26 = arith.maximumf %25, %24 : vector<1x256xf32>
    %27 = vector.broadcast %cst_17 : f32 to vector<1x256xf32>
    %28 = arith.minimumf %27, %26 : vector<1x256xf32>
    %cst_18 = arith.constant 9.99999993E-9 : f32
    %29 = vector.broadcast %cst_18 : f32 to vector<1x256xf32>
    %30 = arith.addf %24, %29 : vector<1x256xf32>
    %31 = tpu.reciprocal %30 {approx = true} : vector<1x256xf32> -> vector<1x256xf32>
    %cst_19 = arith.constant 7.200000e+01 : f32
    %32 = vector.broadcast %cst_19 : f32 to vector<1x256xf32>
    %33 = arith.mulf %32, %31 : vector<1x256xf32>
    %34 = arith.mulf %33, %28 : vector<1x256xf32>
    %c0_20 = arith.constant 0 : index
    %c0_21 = arith.constant 0 : index
    %c0_22 = arith.constant 0 : index
    %35 = vector.load %arg3[%c0_20, %c0_21, %c0_22] : memref<2x4x1xf32, #tpu.memory_space<vmem>>, vector<1x4x1xf32>
    %36 = vector.shape_cast %35 : vector<1x4x1xf32> to vector<4x1xf32>
    %c1 = arith.constant 1 : index
    %c0_23 = arith.constant 0 : index
    %c0_24 = arith.constant 0 : index
    %37 = vector.load %arg3[%c1, %c0_23, %c0_24] : memref<2x4x1xf32, #tpu.memory_space<vmem>>, vector<1x4x1xf32>
    %38 = vector.shape_cast %37 : vector<1x4x1xf32> to vector<4x1xf32>
    %39 = vector.broadcast %36 : vector<4x1xf32> to vector<4x256xf32>
    %40 = arith.subf %23, %39 : vector<4x256xf32>
    %41 = vector.broadcast %34 : vector<1x256xf32> to vector<4x256xf32>
    %42 = arith.mulf %40, %41 : vector<4x256xf32>
    %43 = vector.broadcast %36 : vector<4x1xf32> to vector<4x256xf32>
    %44 = arith.addf %42, %43 : vector<4x256xf32>
    %45 = vector.broadcast %28 : vector<1x256xf32> to vector<4x256xf32>
    %46 = arith.mulf %44, %45 : vector<4x256xf32>
    %47 = vector.broadcast %38 : vector<4x1xf32> to vector<4x256xf32>
    %48 = arith.addf %46, %47 : vector<4x256xf32>
    %cst_25 = arith.constant 0.000000e+00 : f32
    %49 = vector.broadcast %cst_25 : f32 to vector<4x256xf32>
    %50 = arith.cmpf oge, %48, %49 : vector<4x256xf32>
    %cst_26 = arith.constant 0.000000e+00 : f32
    %51 = vector.broadcast %cst_26 : f32 to vector<4x256xf32>
    %52 = arith.mulf %51, %48 : vector<4x256xf32>
    %53 = arith.select %50, %48, %52 : vector<4x256xi1>, vector<4x256xf32>
    %54 = arith.truncf %53 : vector<4x256xf32> to vector<4x256xbf16>
    %c0_27 = arith.constant 0 : index
    %c0_28 = arith.constant 0 : index
    %c0_29 = arith.constant 0 : index
    %55 = vector.load %arg4[%c0_27, %c0_28, %c0_29] : memref<1x4x256xbf16, #tpu.memory_space<vmem>>, vector<1x4x256xbf16>
    %56 = vector.shape_cast %55 : vector<1x4x256xbf16> to vector<4x256xbf16>
    %57 = vector.shape_cast %54 : vector<4x256xbf16> to vector<1x4x256xbf16>
    tpu.vector_store %arg4[%c0_27, %c0_28, %c0_29], %57 {strides = array<i32>} : memref<1x4x256xbf16, #tpu.memory_space<vmem>>, vector<1x4x256xbf16>,
    return
  }
  func.func @transform_0(%arg0: i32) -> (i32, i32, i32) {
    %c0_i32 = arith.constant 0 : i32
    %c0_i32_0 = arith.constant 0 : i32
    %c0_i32_1 = arith.constant 0 : i32
    return %arg0, %c0_i32, %c0_i32_0 : i32, i32, i32
  }
  func.func @transform_1(%arg0: i32) -> (i32, i32) {
    %c0_i32 = arith.constant 0 : i32
    %c0_i32_0 = arith.constant 0 : i32
    %c0_i32_1 = arith.constant 0 : i32
    return %c0_i32, %c0_i32_0 : i32, i32
  }
  func.func @transform_2(%arg0: i32) -> (i32, i32, i32) {
    %c0_i32 = arith.constant 0 : i32
    %c0_i32_0 = arith.constant 0 : i32
    %c0_i32_1 = arith.constant 0 : i32
    %c0_i32_2 = arith.constant 0 : i32
    return %c0_i32, %c0_i32_0, %c0_i32_1 : i32, i32, i32
  }
  func.func @transform_3(%arg0: i32) -> (i32, i32, i32) {
    %c0_i32 = arith.constant 0 : i32
    %c0_i32_0 = arith.constant 0 : i32
    %c0_i32_1 = arith.constant 0 : i32
    return %arg0, %c0_i32, %c0_i32_0 : i32, i32, i32
  }
}

</mosaic_0001>

<bundles_post_ra>
// kernel: partial_decoder_block.1
= control target key start
LH: loop header
LB: loop body
LE: loop exit
PB: predicated region body
PF: predicated region fallthrough
CT: control target
= control target key end

     0   :  { %s737_s12 = smov 0   ;;  %s819_s0 = inlined_call_operand.vmem [shape: bf16[2,16,384], index: 0, kind: input, shape index: {}]   ;;  %s820_s1 = inlined_call_operand.vmem [shape: bf16[8,144], index: 1, kind: input, shape index: {}]   ;;  %s821_s2 = inlined_call_operand.vmem [shape: f32[2,4,1], index: 2, kind: input, shape index: {}]   ;;  %s822_s3 = inlined_call_operand.vmem [shape: bf16[2,4,256], index: 3, kind: output, shape index: {}]  }
   0x1 LB: > { %s637_s13 = sadd.s32 4294967295, %s706_s12   ;;  %p641_p0 = scmp.ge.s32.totalorder %s706_s12, 1  ;;  %s706_s12 = sphi %s737_s12, %s13_s12  }
   0x2   : > { %p137_p1 = scmp.lt.s32.totalorder %s706_s12, 3 }
   0x4   : > { %p138_p2 = pnand %p641_p0, %p137_p1 }
   0x5   : > { %p161_p3 = scmp.lt.s32.totalorder (!%p138_p2), %s637_s13, 1  ;;  %s708_s18 = smov (!%p138_p2), 95  }
   0x6   : > { %141 = sbr.rel (%p138_p2) target bundleno = 432 (0x1b0), region = 32  ;;  %s709_s19 = smov (!%p138_p2), 96  }
   0x7   : > { %s710_s20 = smov (!%p138_p2), 110   ;;  %s711_s21 = smov (!%p138_p2), 111  }
   0x8   : > { %s712_s22 = smov (!%p138_p2), 112   ;;  %s713_s23 = smov (!%p138_p2), 126  }
   0x9   : > { %s714_s24 = smov (!%p138_p2), 127   ;;  %s715_s27 = smov (!%p138_p2), 94  }
   0xb   : > { %s824_s13 = smov (!%p161_p3, %s637_s13), 1  ;;  %v776_v6 = vld [vmem:[%s820_s1] sm:$0xff]  ;;  %vm466_vm0 = vcmask 130048   ;;  %v716_v8 = vmov 0   ;;  %vm194_vm1 = vcmask 1043456   ;;  %vm322_vm2 = vcmask 777216  }
   0xc   : > { %s672_s14 = smul.u32 24, %s824_s13  ;;  %v646_v7 = vcombine.high %v776_v6, %v776_v6  ;;  %690 = vset.pattern.permute.xlu0 %v716_v8  ;;  %691 = vset.pattern.permute.xlu1 %v716_v8  ;;  %v523_v9 = vld [vmem:[%s821_s2] sm:$0xf]  ;;  %v666_v10 = vld [vmem:[%s821_s2 + $0x4] sm:$0xf]  ;;  %vm301_vm3 = vcmask 785408  }
   0xd   : > { %vm280_vm4 = vcmask 900096   ;;  %vm259_vm5 = vcmask 908288   ;;  %vm238_vm6 = vcmask 916480   ;;  %vm217_vm7 = vcmask 1031168   ;;  %s671_s5 = sshll.u32 %s824_s13, 2 }
   0xe   : > { %s165_s17 = scalar_lea.vmem %s819_s0, %s672_s14  ;;  %665 = vmatprep.mubr.msk.bf16.mxu0 %vm466_vm0, %v646_v7  ;;  %vm196_vm8 = vcmask 1039360   ;;  %vm343_vm9 = vcmask 769024   ;;  %s170_s8 = scalar_lea.vmem %s822_s3, %s671_s5 }
   0xf   : > { %v751_v0 = vld [vmem:[%s165_s17 + $0xc] sm:$0xff]  ;;  %v753_v1 = vld [vmem:[%s165_s17] sm:$0xff]  ;;  %v175_v2 = vld [vmem:[%s165_s17 + $0x14] sm:$0xf] }
  0x10   : > { %313 = vrot.lane.b32.xlu1 %v751_v0, %s708_s18  ;;  %309 = vrot.lane.b32.xlu0 %v753_v1, %s708_s18  ;;  %v173_v3 = vld [vmem:[%s165_s17 + $0x8] sm:$0xf]  ;;  %v648_v4 = vcombine.high %v753_v1, %v751_v0  ;;  %v647_v5 = vcombine.low %v753_v1, %v751_v0 }
  0x14   : > { %315 = vrot.lane.b32.xlu1 %v175_v2, %s708_s18  ;;  %311 = vrot.lane.b32.xlu0 %v173_v3, %s708_s18 }
  0x18   : > { %290 = vrot.lane.b32.xlu1 %v173_v3, %s709_s19  ;;  %288 = vrot.lane.b32.xlu0 %v753_v1, %s709_s19 }
  0x1c   : > { %294 = vrot.lane.b32.xlu1 %v175_v2, %s709_s19  ;;  %292 = vrot.lane.b32.xlu0 %v751_v0, %s709_s19 }
  0x20   : > { %269 = vrot.lane.b32.xlu1 %v173_v3, %s710_s20  ;;  %267 = vrot.lane.b32.xlu0 %v753_v1, %s710_s20 }
  0x24   : > { %273 = vrot.lane.b32.xlu1 %v175_v2, %s710_s20  ;;  %271 = vrot.lane.b32.xlu0 %v751_v0, %s710_s20 }
  0x28   : > { %248 = vrot.lane.b32.xlu1 %v173_v3, %s711_s21  ;;  %246 = vrot.lane.b32.xlu0 %v753_v1, %s711_s21 }
  0x2c   : > { %252 = vrot.lane.b32.xlu1 %v175_v2, %s711_s21  ;;  %250 = vrot.lane.b32.xlu0 %v751_v0, %s711_s21 }
  0x30   : > { %227 = vrot.lane.b32.xlu1 %v173_v3, %s712_s22  ;;  %225 = vrot.lane.b32.xlu0 %v753_v1, %s712_s22 }
  0x34   : > { %231 = vrot.lane.b32.xlu1 %v175_v2, %s712_s22  ;;  %229 = vrot.lane.b32.xlu0 %v751_v0, %s712_s22 }
  0x38   : > { %206 = vrot.lane.b32.xlu1 %v173_v3, %s713_s23  ;;  %204 = vrot.lane.b32.xlu0 %v753_v1, %s713_s23 }
  0x3c   : > { %210 = vrot.lane.b32.xlu1 %v175_v2, %s713_s23  ;;  %208 = vrot.lane.b32.xlu0 %v751_v0, %s713_s23 }
  0x40   : > { %184 = vrot.lane.b32.xlu1 %v173_v3, %s714_s24  ;;  %182 = vrot.lane.b32.xlu0 %v753_v1, %s714_s24 }
  0x44   : > { %188 = vrot.lane.b32.xlu1 %v175_v2, %s714_s24  ;;  %186 = vrot.lane.b32.xlu0 %v751_v0, %s714_s24 }
  0x48   : > { %332 = vrot.lane.b32.xlu1 %v173_v3, %s715_s27  ;;  %330 = vrot.lane.b32.xlu0 %v753_v1, %s715_s27 }
  0x4c   : > { %336 = vrot.lane.b32.xlu1 %v175_v2, %s715_s27  ;;  %334 = vrot.lane.b32.xlu0 %v751_v0, %s715_s27 }
  0x50   : > { %528 = vperm.xlu0 %690, %v523_v9   ;;  %557 = vperm.xlu1 %691, %v666_v10  }
  0x82   : > { %v314_v11 = vpop.permute.xlu1 %313  ;;  %v310_v12 = vpop.permute.xlu0 %309 }
  0x83   : > { %v319_v15 = vrot.slane %v314_v11, 4  ;;  %v317_v16 = vrot.slane %v310_v12, 4 }
  0x86   : > { %v316_v13 = vpop.permute.xlu1 %315  ;;  %v312_v14 = vpop.permute.xlu0 %311 }
  0x87   : > { %v320_v17 = vrot.slane %v316_v13, 4  ;;  %v318_v18 = vrot.slane %v312_v14, 4 }
  0x89   : > { %v321_v19 = vsel %vm194_vm1, %v317_v16, %v318_v18  ;;  %v324_v20 = vsel %vm194_vm1, %v319_v15, %v320_v17 }
  0x8a   : > { %v291_v21 = vpop.permute.xlu1 %290  ;;  %v289_v22 = vpop.permute.xlu0 %288  ;;  %v323_v23 = vsel %vm322_vm2, %v310_v12, %v321_v19  ;;  %v325_v24 = vsel %vm322_vm2, %v314_v11, %v324_v20 }
  0x8b   : > { %v297_v25 = vrot.slane %v291_v21, 4  ;;  %v296_v26 = vrot.slane %v289_v22, 4  ;;  %v662_v27 = vcombine.high %v323_v23, %v325_v24  ;;  %v661_v28 = vcombine.low %v323_v23, %v325_v24 }
  0x8d   : > { %470 = vmatprep.subr.bf16.mxu0 %v662_v27  ;;  %v300_v31 = vsel %vm194_vm1, %v296_v26, %v297_v25 }
  0x8e   : > { %v295_v29 = vpop.permute.xlu1 %294  ;;  %471 = vmatpush1.bf16.msra.mxu0 %v661_v28  ;;  %v293_v30 = vpop.permute.xlu0 %292  ;;  %v302_v35 = vsel %vm301_vm3, %v289_v22, %v300_v31 }
  0x8f   : > { %v299_v32 = vrot.slane %v295_v29, 4  ;;  %v298_v33 = vrot.slane %v293_v30, 4 }
  0x91   : > { %v303_v34 = vsel %vm194_vm1, %v298_v33, %v299_v32 }
  0x92   : > { %v304_v36 = vsel %vm301_vm3, %v293_v30, %v303_v34  ;;  %v270_v37 = vpop.permute.xlu1 %269  ;;  %v268_v38 = vpop.permute.xlu0 %267 }
  0x93   : > { %v659_v39 = vcombine.low %v302_v35, %v304_v36  ;;  %v660_v40 = vcombine.high %v302_v35, %v304_v36  ;;  %v276_v41 = vrot.slane %v270_v37, 4  ;;  %v275_v42 = vrot.slane %v268_v38, 4 }
  0x95   : > { %472 = vmatprep.subr.bf16.mxu0 %v660_v40  ;;  %v279_v45 = vsel %vm194_vm1, %v275_v42, %v276_v41 }
  0x96   : > { %v274_v43 = vpop.permute.xlu1 %273  ;;  %473 = vmatpush1.bf16.msra.mxu0 %v659_v39  ;;  %v272_v44 = vpop.permute.xlu0 %271  ;;  %v281_v49 = vsel %vm280_vm4, %v268_v38, %v279_v45 }
  0x97   : > { %v278_v46 = vrot.slane %v274_v43, 4  ;;  %v277_v47 = vrot.slane %v272_v44, 4 }
  0x99   : > { %v282_v48 = vsel %vm194_vm1, %v277_v47, %v278_v46 }
  0x9a   : > { %v283_v50 = vsel %vm280_vm4, %v272_v44, %v282_v48  ;;  %v249_v51 = vpop.permute.xlu1 %248  ;;  %v247_v52 = vpop.permute.xlu0 %246 }
  0x9b   : > { %v657_v53 = vcombine.low %v281_v49, %v283_v50  ;;  %v658_v54 = vcombine.high %v281_v49, %v283_v50  ;;  %v255_v55 = vrot.slane %v249_v51, 4  ;;  %v254_v56 = vrot.slane %v247_v52, 4 }
  0x9d   : > { %474 = vmatprep.subr.bf16.mxu0 %v658_v54  ;;  %v258_v59 = vsel %vm194_vm1, %v254_v56, %v255_v55 }
  0x9e   : > { %v253_v57 = vpop.permute.xlu1 %252  ;;  %475 = vmatpush1.bf16.msra.mxu0 %v657_v53  ;;  %v251_v58 = vpop.permute.xlu0 %250  ;;  %v260_v63 = vsel %vm259_vm5, %v247_v52, %v258_v59 }
  0x9f   : > { %v257_v60 = vrot.slane %v253_v57, 4  ;;  %v256_v61 = vrot.slane %v251_v58, 4 }
  0xa1   : > { %v261_v62 = vsel %vm194_vm1, %v256_v61, %v257_v60 }
  0xa2   : > { %v262_v2 = vsel %vm259_vm5, %v251_v58, %v261_v62  ;;  %v228_v3 = vpop.permute.xlu1 %227  ;;  %v226_v7 = vpop.permute.xlu0 %225 }
  0xa3   : > { %v655_v8 = vcombine.low %v260_v63, %v262_v2  ;;  %v656_v9 = vcombine.high %v260_v63, %v262_v2  ;;  %v234_v10 = vrot.slane %v228_v3, 4  ;;  %v233_v11 = vrot.slane %v226_v7, 4 }
  0xa4   : > { %v645_v2 = vcombine.low %v776_v6, %v776_v6 }
  0xa5   : > { %476 = vmatprep.subr.bf16.mxu0 %v656_v9  ;;  %v237_v14 = vsel %vm194_vm1, %v233_v11, %v234_v10  ;;  %v533_v11 = vlaneseq }
  0xa6   : > { %v232_v12 = vpop.permute.xlu1 %231  ;;  %477 = vmatpush1.bf16.msra.mxu0 %v655_v8  ;;  %v230_v13 = vpop.permute.xlu0 %229  ;;  %v239_v18 = vsel %vm238_vm6, %v226_v7, %v237_v14 }
  0xa7   : > { %v236_v15 = vrot.slane %v232_v12, 4  ;;  %v235_v16 = vrot.slane %v230_v13, 4  ;;  %v534_v0 = vshrl.u32 %v533_v11, 7 }
  0xa9   : > { %v240_v17 = vsel %vm194_vm1, %v235_v16, %v236_v15 }
  0xaa   : > { %v241_v19 = vsel %vm238_vm6, %v230_v13, %v240_v17  ;;  %v207_v20 = vpop.permute.xlu1 %206  ;;  %v205_v21 = vpop.permute.xlu0 %204  ;;  %v535_v17 = vsub.s32 4, %v534_v0 }
  0xab   : > { %v653_v22 = vcombine.low %v239_v18, %v241_v19  ;;  %v654_v23 = vcombine.high %v239_v18, %v241_v19  ;;  %v213_v24 = vrot.slane %v207_v20, 4  ;;  %v212_v25 = vrot.slane %v205_v21, 4 }
  0xad   : > { %478 = vmatprep.subr.bf16.mxu0 %v654_v23  ;;  %v216_v28 = vsel %vm194_vm1, %v212_v25, %v213_v24 }
  0xae   : > { %v211_v26 = vpop.permute.xlu1 %210  ;;  %479 = vmatpush1.bf16.msra.mxu0 %v653_v22  ;;  %v209_v27 = vpop.permute.xlu0 %208  ;;  %v218_v32 = vsel %vm217_vm7, %v205_v21, %v216_v28 }
  0xaf   : > { %v215_v29 = vrot.slane %v211_v26, 4  ;;  %v214_v30 = vrot.slane %v209_v27, 4 }
  0xb1   : > { %v219_v31 = vsel %vm194_vm1, %v214_v30, %v215_v29 }
  0xb2   : > { %v220_v33 = vsel %vm217_vm7, %v209_v27, %v219_v31  ;;  %v185_v34 = vpop.permute.xlu1 %184  ;;  %v183_v35 = vpop.permute.xlu0 %182 }
  0xb3   : > { %v651_v36 = vcombine.low %v218_v32, %v220_v33  ;;  %v652_v37 = vcombine.high %v218_v32, %v220_v33  ;;  %v191_v38 = vrot.slane %v185_v34, 4  ;;  %v190_v39 = vrot.slane %v183_v35, 4 }
  0xb5   : > { %480 = vmatprep.subr.bf16.mxu0 %v652_v37  ;;  %v195_v42 = vsel %vm194_vm1, %v190_v39, %v191_v38 }
  0xb6   : > { %v189_v40 = vpop.permute.xlu1 %188  ;;  %481 = vmatpush1.bf16.msra.mxu0 %v651_v36  ;;  %v187_v41 = vpop.permute.xlu0 %186  ;;  %v197_v46 = vsel %vm196_vm8, %v183_v35, %v195_v42 }
  0xb7   : > { %v193_v43 = vrot.slane %v189_v40, 4  ;;  %v192_v44 = vrot.slane %v187_v41, 4 }
  0xb9   : > { %v198_v45 = vsel %vm194_vm1, %v192_v44, %v193_v43 }
  0xba   : > { %v199_v47 = vsel %vm196_vm8, %v187_v41, %v198_v45  ;;  %v333_v48 = vpop.permute.xlu1 %332  ;;  %v331_v49 = vpop.permute.xlu0 %330 }
  0xbb   : > { %v649_v50 = vcombine.low %v197_v46, %v199_v47  ;;  %v650_v51 = vcombine.high %v197_v46, %v199_v47  ;;  %v339_v52 = vrot.slane %v333_v48, 4  ;;  %v338_v53 = vrot.slane %v331_v49, 4 }
  0xbd   : > { %482 = vmatprep.subr.bf16.mxu0 %v650_v51  ;;  %v342_v56 = vsel %vm194_vm1, %v338_v53, %v339_v52 }
  0xbe   : > { %v337_v54 = vpop.permute.xlu1 %336  ;;  %483 = vmatpush1.bf16.msra.mxu0 %v649_v50  ;;  %v335_v55 = vpop.permute.xlu0 %334  ;;  %v344_v60 = vsel %vm343_vm9, %v331_v49, %v342_v56 }
  0xbf   : > { %v341_v57 = vrot.slane %v337_v54, 4  ;;  %v340_v58 = vrot.slane %v335_v55, 4  ;;  %484 = vmatprep.subr.bf16.mxu0 %v648_v4 }
  0xc1   : > { %v345_v59 = vsel %vm194_vm1, %v340_v58, %v341_v57 }
  0xc2   : > { %v346_v61 = vsel %vm343_vm9, %v335_v55, %v345_v59  ;;  %485 = vmatpush1.bf16.msra.mxu0 %v647_v5 }
  0xc3   : > { %v663_v62 = vcombine.low %v344_v60, %v346_v61  ;;  %v664_v63 = vcombine.high %v344_v60, %v346_v61 }
  0xc5   : > { %500 = vmatprep.subr.bf16.mxu0 %v664_v63 }
  0xc6   : > { %501 = vmatpush2.bf16.msra.mxu0 %v663_v62 }
  0xc9   : > { %503 = vmatmul.mubr.bf16.vlgmr.msra.gmra.mxu0 %v645_v2 }
  0xcb   : > { %v529_v16 = vpop.permute.xlu0 %528  ;;  %v558_v29 = vpop.permute.xlu1 %557 }
 0x189   : > { %v504_v3 = vpop.f32.mrf.mxu0 }
 0x18a   : > { %v515_v7 = vadd.f32 1e-08, %v504_v3  ;;  %v511_v12 = vmax.f32 %v504_v3, 0.0  ;;  %v531_v20 = vsub.f32 %v504_v3, %v529_v16 }
 0x18b   : > { %v506_v8 = vpop.f32.mrf.mxu0 }
 0x18c   : > { %696 = vrcp.f32 %v515_v7  ;;  %v516_v4 = vadd.f32 1e-08, %v506_v8  ;;  %v512_v1 = vmax.f32 %v506_v8, 0.0  ;;  %v513_v13 = vmin.f32 %v511_v12, 1.0 }
 0x18d   : > { %v508_v9 = vpop.f32.mrf.mxu0  ;;  %v532_v24 = vsub.f32 %v506_v8, %v529_v16 }
 0x18e   : > { %698 = vrcp.f32 %v516_v4  ;;  %v514_v18 = vmin.f32 %v512_v1, 1.0  ;;  %v548_v28 = vrot.slane %v513_v13, %v535_v17 }
 0x18f   : > { %v509_v10 = vpop.f32.mrf.mxu0 }
 0x190   : > { %v552_v31 = vrot.slane %v514_v18, %v535_v17 }
 0x199   : > { %v697_v5 = vpop.eup %696 }
 0x19a   : > { %v519_v14 = vmul.f32 72.0, %v697_v5 }
 0x19b   : > { %v699_v15 = vpop.eup %698 }
 0x19c   : > { %v521_v6 = vmul.f32 %v519_v14, %v513_v13  ;;  %v520_v19 = vmul.f32 72.0, %v699_v15 }
 0x19e   : > { %v536_v21 = vrot.slane %v521_v6, %v535_v17  ;;  %v522_v22 = vmul.f32 %v520_v19, %v514_v18 }
 0x1a0   : > { %v541_v23 = vmul.f32 %v536_v21, %v531_v20  ;;  %v540_v25 = vrot.slane %v522_v22, %v535_v17 }
 0x1a2   : > { %v542_v26 = vmul.f32 %v540_v25, %v532_v24  ;;  %v543_v27 = vadd.f32 %v541_v23, %v529_v16 }
 0x1a4   : > { %v544_v30 = vadd.f32 %v542_v26, %v529_v16  ;;  %v553_v32 = vmul.f32 %v548_v28, %v543_v27 }
 0x1a6   : > { %v554_v33 = vmul.f32 %v552_v31, %v544_v30  ;;  %v560_v34 = vadd.f32 %v558_v29, %v553_v32 }
 0x1a8   : > { %v561_v35 = vadd.f32 %v558_v29, %v554_v33  ;;  %v564_v36 = vmul.f32 0.0, %v560_v34  ;;  %vm562_vm10 = vcmp.ge.f32.partialorder %v560_v34, 0.0 }
 0x1aa   : > { %vm563_vm11 = vcmp.ge.f32.partialorder %v561_v35, 0.0  ;;  %v565_v37 = vmul.f32 0.0, %v561_v35  ;;  %v566_v38 = vsel %vm562_vm10, %v560_v34, %v564_v36 }
 0x1ac   : > { %v567_v39 = vsel %vm563_vm11, %v561_v35, %v565_v37 }
 0x1ad   : > { %v667_v40 = vpack.c.bf16 %v567_v39, %v566_v38 }
 0x1af   : > { %668 = vst.sshfl [vmem:[%s170_s8] sm:$0x33 pattern:$0x76325410] %v667_v40 }
 0x1b0 PF: > { %s13_s12 = sadd.s32 1, %s706_s12  }
 0x1b1   : > { %p10_p4 = scmp.ge.s32.totalorder %s13_s12, 4  }
 0x1b3   :  { %12 = sbr.rel (!%p10_p4) target bundleno = 1 (0x1), region = 63 }

</bundles_post_ra>
